<compile_context>
chip_gen: v6e
topology: v6e:2x2x1
jax: 0.10.0
libtpu: 0.0.40
codegen_flags: <defaults>
</compile_context>

<pallas_src>
import functools

import jax
import jax.numpy as jnp
from jax.experimental import pallas as pl
from jax.experimental.pallas import tpu as pltpu


def _embed_avg_kernel(ids_ref, table_ref, out_ref, *, compute_dtype):
    # ids_ref:   (TM, W) int32   -- TM flattened (batch, sent) rows
    # table_ref: (V, E)  float32 -- full embedding table, resident in VMEM
    # out_ref:   (TM, E) float32
    ids = ids_ref[...]
    TM, W = ids.shape
    V = table_ref.shape[0]

    # Hoisted (1, V) vocab iota; broadcasting against the (TM, 1) ids column
    # expands it, so only the (TM, V) counts accumulator stays live.
    vocab_iota = jax.lax.broadcasted_iota(jnp.int32, (1, V), 1)
    if compute_dtype == jnp.bfloat16:
        # Exact for integer values <= 256 (guarded in the wrapper); ~2x VPU
        # throughput on v6e/v7x in the dominant compare/accumulate loop.
        ids_c = ids.astype(jnp.bfloat16)
        iota_c = vocab_iota.astype(jnp.bfloat16)
    else:
        ids_c = ids
        iota_c = vocab_iota

    # counts[m, v] = #{w : ids[m, w] == v}; accumulated one word column at a
    # time (static unroll over the small word axis) -- no (TM, W, V) one-hot.
    counts = jnp.zeros((TM, V), compute_dtype)
    for w in range(W):
        counts = counts + (ids_c[:, w:w + 1] == iota_c).astype(compute_dtype)

    # Sum of embeddings over the word axis == counts @ table (one MXU matmul,
    # f32 accumulation for parity with the reference).
    emb_sum = jnp.dot(counts.astype(jnp.float32), table_ref[...],
                      preferred_element_type=jnp.float32)          # (TM, E)

    # lengths = (ids > 1).sum(word_axis) + 1e-9, derived from counts: token
    # ids 0 and 1 are exactly the tokens that fail `ids > 1`.
    num_short = (counts[:, 0:1] + counts[:, 1:2]).astype(jnp.float32)
    lengths = jnp.float32(W) - num_short + jnp.float32(1e-9)        # (TM, 1)

    # Divide via the EUP reciprocal (free slot vs. the VALU-bound loop).
    # Dropout(p=0.5) is identity in eval mode.
    # TODO(synk): training-mode dropout would need pltpu.prng_seed +
    #             pltpu.stateful_bernoulli; eval-only forward implemented.
    # TODO(synk): with E < 128 this store is lane-masked; a lane-dense output
    #             repack (k rows -> one k*E row) only pays off if it avoids a
    #             cross-(8,128)-tile relayout; production E >= 128 makes the
    #             out block lane-dense automatically.
    out_ref[...] = (emb_sum * pl.reciprocal(lengths, approx=True)).astype(
        out_ref.dtype)


def model_embeddings_forward(ids, word_vectors, *, tile_m=256):
    """ids: (B, S, W) int32; word_vectors: (V, E) float32 -> (B, S, E) float32."""
    B, S, W = ids.shape
    V, E = word_vectors.shape
    M = B * S

    def round_up(x, m):
        return ((x + m - 1) // m) * m

    # M tile: as large as tile_m allows, but keep >= 2 grid steps whenever M
    # allows it (v7x megacore sharding + DMA/compute overlap).
    tm = min(tile_m, round_up(M, 8))
    if M > 8 and pl.cdiv(M, tm) < 2:
        tm = round_up(pl.cdiv(M, 2), 8)
    m_pad = round_up(M, tm)

    ids2 = ids.reshape(M, W).astype(jnp.int32)
    if m_pad != M:
        # Padded rows (ids=0) yield lengths ~1e-9 / garbage outputs; they are
        # sliced off below and must never be consumed by a fused follower.
        ids2 = jnp.pad(ids2, ((0, m_pad - M), (0, 0)))

    # bf16 counts loop on v6e/v7x only (exact for V, W <= 256); f32 otherwise.
    compute_dtype = jnp.float32
    if V <= 256 and W <= 256:
        try:
            kind = jax.devices()[0].device_kind.lower()
            if ("v6" in kind) or ("v7" in kind):
                compute_dtype = jnp.bfloat16
        except Exception:
            pass

    # VMEM budget: single-buffered table (whole-array, non-pipelined block) +
    # double-buffered ids/out blocks + counts scratch.  Raise the scoped limit
    # only when the smallest default (16 MiB on v5e) would be exceeded, capped
    # at 48 MiB so v7x (64 MiB physical per-TC) keeps compiler-scratch headroom.
    cbytes = jnp.dtype(compute_dtype).itemsize
    est_vmem = (V * E * 4                 # resident table, exactly one copy
                + 2 * tm * W * 4          # double-buffered ids blocks
                + 2 * tm * E * 4          # double-buffered out blocks
                + 2 * tm * V * cbytes     # counts accumulator + headroom
                + tm * V * 4)             # f32 counts cast feeding the MXU
    vmem_limit = None
    if est_vmem > 16 * 1024 * 1024:
        vmem_limit = min(int(est_vmem * 3 // 2), 48 * 1024 * 1024)

    # TODO(synk): for word-level vocabularies (V >~ 1-2k) the (TM, V) one-hot
    #             counts blow the vreg file / VALU budget (and on v7x the
    #             resident f32 table must fit single-buffered in 64 MiB):
    #             switch to a scalar-prefetched DMA row-gather with the table
    #             left in HBM (pl.ANY) instead of the one-hot matmul.

    out = pl.pallas_call(
        functools.partial(_embed_avg_kernel, compute_dtype=compute_dtype),
        out_shape=jax.ShapeDtypeStruct((m_pad, E), jnp.float32),
        grid_spec=pltpu.PrefetchScalarGridSpec(
            num_scalar_prefetch=0,
            grid=(m_pad // tm,),
            in_specs=[
                pl.BlockSpec((tm, W), lambda i: (i, 0)),
                # Whole-array VMEM residency: grid-invariant and outside the
                # pipelined set -> exactly one (single-buffered) copy.
                pl.BlockSpec(memory_space=pltpu.MemorySpace.VMEM),
            ],
            out_specs=pl.BlockSpec((tm, E), lambda i: (i, 0)),
        ),
        compiler_params=pltpu.CompilerParams(
            dimension_semantics=("parallel",),
            vmem_limit_bytes=vmem_limit,
        ),
    )(ids2, word_vectors.astype(jnp.float32))

    return out[:M].reshape(B, S, E)


def _reference(ids, word_vectors):
    emb = word_vectors[ids]                                        # (B, S, W, E)
    lengths = (ids > 1).sum(axis=2, keepdims=True).astype(jnp.float32) + 1e-9
    return emb.sum(axis=2) / lengths


if __name__ == "__main__":
    key = jax.random.PRNGKey(0)
    k_vec, k_ids = jax.random.split(key)

    B, S, W = 2, 8, 16       # batch, max_sent_length, max_word_length
    V, E = 64, 32            # vocab size, embed_size

    # Deterministic "pretrained" word vectors and token ids.
    word_vectors = jax.random.normal(k_vec, (V, E), dtype=jnp.float32)
    ids = jax.random.randint(k_ids, (B, S, W), 0, V, dtype=jnp.int32)

    out = model_embeddings_forward(ids, word_vectors)
    out = jax.block_until_ready(out)

    ref = _reference(ids, word_vectors)
    assert out.shape == (B, S, E)
    # Tolerance covers the approx EUP reciprocal (and optional bf16 counts).
    assert jnp.allclose(out, ref, atol=1e-2, rtol=1e-2), float(
        jnp.max(jnp.abs(out - ref)))

    print("KERNEL_OK")
</pallas_src>

<mosaic_0001>
module attributes {stable_mosaic.version = 11 : i64} {
  func.func @_embed_avg_kernel(%arg0: i32, %arg1: memref<8x16xi32, #tpu.memory_space<vmem>>, %arg2: memref<64x32xf32, #tpu.memory_space<vmem>>, %arg3: memref<8x32xf32, #tpu.memory_space<vmem>>) attributes {dimension_semantics = [#tpu.dimension_semantics<parallel>], iteration_bounds = array<i64: 2>, scalar_prefetch = 0 : i64, scratch_operands = 0 : i64, tpu.core_type = #tpu.core_type<tc>, window_params = [{transform_indices = @transform_0, window_bounds = array<i64: 8, 16>}, {pipeline_mode = #tpu.pipeline_mode<synchronous>, transform_indices = @transform_1, window_bounds = array<i64: 64, 32>}, {transform_indices = @transform_2, window_bounds = array<i64: 8, 32>}]} {
    %c0 = arith.constant 0 : index
    %c0_0 = arith.constant 0 : index
    %0 = vector.load %arg1[%c0, %c0_0] : memref<8x16xi32, #tpu.memory_space<vmem>>, vector<8x16xi32>
    %1 = tpu.iota {dimensions = array<i32: 1>} : vector<1x64xi32>
    %cst = arith.constant 0.000000e+00 : f32
    %2 = vector.broadcast %cst : f32 to vector<8x64xf32>
    %3 = vector.extract_strided_slice %0 {offsets = [0, 0], sizes = [8, 1], strides = [1, 1]} : vector<8x16xi32> to vector<8x1xi32>
    %4 = vector.broadcast %3 : vector<8x1xi32> to vector<8x64xi32>
    %5 = vector.broadcast %1 : vector<1x64xi32> to vector<8x64xi32>
    %6 = arith.cmpi eq, %4, %5 : vector<8x64xi32>
    %7 = arith.extui %6 : vector<8x64xi1> to vector<8x64xi32>
    %8 = arith.sitofp %7 : vector<8x64xi32> to vector<8x64xf32>
    %9 = arith.addf %2, %8 : vector<8x64xf32>
    %10 = vector.extract_strided_slice %0 {offsets = [0, 1], sizes = [8, 1], strides = [1, 1]} : vector<8x16xi32> to vector<8x1xi32>
    %11 = vector.broadcast %10 : vector<8x1xi32> to vector<8x64xi32>
    %12 = vector.broadcast %1 : vector<1x64xi32> to vector<8x64xi32>
    %13 = arith.cmpi eq, %11, %12 : vector<8x64xi32>
    %14 = arith.extui %13 : vector<8x64xi1> to vector<8x64xi32>
    %15 = arith.sitofp %14 : vector<8x64xi32> to vector<8x64xf32>
    %16 = arith.addf %9, %15 : vector<8x64xf32>
    %17 = vector.extract_strided_slice %0 {offsets = [0, 2], sizes = [8, 1], strides = [1, 1]} : vector<8x16xi32> to vector<8x1xi32>
    %18 = vector.broadcast %17 : vector<8x1xi32> to vector<8x64xi32>
    %19 = vector.broadcast %1 : vector<1x64xi32> to vector<8x64xi32>
    %20 = arith.cmpi eq, %18, %19 : vector<8x64xi32>
    %21 = arith.extui %20 : vector<8x64xi1> to vector<8x64xi32>
    %22 = arith.sitofp %21 : vector<8x64xi32> to vector<8x64xf32>
    %23 = arith.addf %16, %22 : vector<8x64xf32>
    %24 = vector.extract_strided_slice %0 {offsets = [0, 3], sizes = [8, 1], strides = [1, 1]} : vector<8x16xi32> to vector<8x1xi32>
    %25 = vector.broadcast %24 : vector<8x1xi32> to vector<8x64xi32>
    %26 = vector.broadcast %1 : vector<1x64xi32> to vector<8x64xi32>
    %27 = arith.cmpi eq, %25, %26 : vector<8x64xi32>
    %28 = arith.extui %27 : vector<8x64xi1> to vector<8x64xi32>
    %29 = arith.sitofp %28 : vector<8x64xi32> to vector<8x64xf32>
    %30 = arith.addf %23, %29 : vector<8x64xf32>
    %31 = vector.extract_strided_slice %0 {offsets = [0, 4], sizes = [8, 1], strides = [1, 1]} : vector<8x16xi32> to vector<8x1xi32>
    %32 = vector.broadcast %31 : vector<8x1xi32> to vector<8x64xi32>
    %33 = vector.broadcast %1 : vector<1x64xi32> to vector<8x64xi32>
    %34 = arith.cmpi eq, %32, %33 : vector<8x64xi32>
    %35 = arith.extui %34 : vector<8x64xi1> to vector<8x64xi32>
    %36 = arith.sitofp %35 : vector<8x64xi32> to vector<8x64xf32>
    %37 = arith.addf %30, %36 : vector<8x64xf32>
    %38 = vector.extract_strided_slice %0 {offsets = [0, 5], sizes = [8, 1], strides = [1, 1]} : vector<8x16xi32> to vector<8x1xi32>
    %39 = vector.broadcast %38 : vector<8x1xi32> to vector<8x64xi32>
    %40 = vector.broadcast %1 : vector<1x64xi32> to vector<8x64xi32>
    %41 = arith.cmpi eq, %39, %40 : vector<8x64xi32>
    %42 = arith.extui %41 : vector<8x64xi1> to vector<8x64xi32>
    %43 = arith.sitofp %42 : vector<8x64xi32> to vector<8x64xf32>
    %44 = arith.addf %37, %43 : vector<8x64xf32>
    %45 = vector.extract_strided_slice %0 {offsets = [0, 6], sizes = [8, 1], strides = [1, 1]} : vector<8x16xi32> to vector<8x1xi32>
    %46 = vector.broadcast %45 : vector<8x1xi32> to vector<8x64xi32>
    %47 = vector.broadcast %1 : vector<1x64xi32> to vector<8x64xi32>
    %48 = arith.cmpi eq, %46, %47 : vector<8x64xi32>
    %49 = arith.extui %48 : vector<8x64xi1> to vector<8x64xi32>
    %50 = arith.sitofp %49 : vector<8x64xi32> to vector<8x64xf32>
    %51 = arith.addf %44, %50 : vector<8x64xf32>
    %52 = vector.extract_strided_slice %0 {offsets = [0, 7], sizes = [8, 1], strides = [1, 1]} : vector<8x16xi32> to vector<8x1xi32>
    %53 = vector.broadcast %52 : vector<8x1xi32> to vector<8x64xi32>
    %54 = vector.broadcast %1 : vector<1x64xi32> to vector<8x64xi32>
    %55 = arith.cmpi eq, %53, %54 : vector<8x64xi32>
    %56 = arith.extui %55 : vector<8x64xi1> to vector<8x64xi32>
    %57 = arith.sitofp %56 : vector<8x64xi32> to vector<8x64xf32>
    %58 = arith.addf %51, %57 : vector<8x64xf32>
    %59 = vector.extract_strided_slice %0 {offsets = [0, 8], sizes = [8, 1], strides = [1, 1]} : vector<8x16xi32> to vector<8x1xi32>
    %60 = vector.broadcast %59 : vector<8x1xi32> to vector<8x64xi32>
    %61 = vector.broadcast %1 : vector<1x64xi32> to vector<8x64xi32>
    %62 = arith.cmpi eq, %60, %61 : vector<8x64xi32>
    %63 = arith.extui %62 : vector<8x64xi1> to vector<8x64xi32>
    %64 = arith.sitofp %63 : vector<8x64xi32> to vector<8x64xf32>
    %65 = arith.addf %58, %64 : vector<8x64xf32>
    %66 = vector.extract_strided_slice %0 {offsets = [0, 9], sizes = [8, 1], strides = [1, 1]} : vector<8x16xi32> to vector<8x1xi32>
    %67 = vector.broadcast %66 : vector<8x1xi32> to vector<8x64xi32>
    %68 = vector.broadcast %1 : vector<1x64xi32> to vector<8x64xi32>
    %69 = arith.cmpi eq, %67, %68 : vector<8x64xi32>
    %70 = arith.extui %69 : vector<8x64xi1> to vector<8x64xi32>
    %71 = arith.sitofp %70 : vector<8x64xi32> to vector<8x64xf32>
    %72 = arith.addf %65, %71 : vector<8x64xf32>
    %73 = vector.extract_strided_slice %0 {offsets = [0, 10], sizes = [8, 1], strides = [1, 1]} : vector<8x16xi32> to vector<8x1xi32>
    %74 = vector.broadcast %73 : vector<8x1xi32> to vector<8x64xi32>
    %75 = vector.broadcast %1 : vector<1x64xi32> to vector<8x64xi32>
    %76 = arith.cmpi eq, %74, %75 : vector<8x64xi32>
    %77 = arith.extui %76 : vector<8x64xi1> to vector<8x64xi32>
    %78 = arith.sitofp %77 : vector<8x64xi32> to vector<8x64xf32>
    %79 = arith.addf %72, %78 : vector<8x64xf32>
    %80 = vector.extract_strided_slice %0 {offsets = [0, 11], sizes = [8, 1], strides = [1, 1]} : vector<8x16xi32> to vector<8x1xi32>
    %81 = vector.broadcast %80 : vector<8x1xi32> to vector<8x64xi32>
    %82 = vector.broadcast %1 : vector<1x64xi32> to vector<8x64xi32>
    %83 = arith.cmpi eq, %81, %82 : vector<8x64xi32>
    %84 = arith.extui %83 : vector<8x64xi1> to vector<8x64xi32>
    %85 = arith.sitofp %84 : vector<8x64xi32> to vector<8x64xf32>
    %86 = arith.addf %79, %85 : vector<8x64xf32>
    %87 = vector.extract_strided_slice %0 {offsets = [0, 12], sizes = [8, 1], strides = [1, 1]} : vector<8x16xi32> to vector<8x1xi32>
    %88 = vector.broadcast %87 : vector<8x1xi32> to vector<8x64xi32>
    %89 = vector.broadcast %1 : vector<1x64xi32> to vector<8x64xi32>
    %90 = arith.cmpi eq, %88, %89 : vector<8x64xi32>
    %91 = arith.extui %90 : vector<8x64xi1> to vector<8x64xi32>
    %92 = arith.sitofp %91 : vector<8x64xi32> to vector<8x64xf32>
    %93 = arith.addf %86, %92 : vector<8x64xf32>
    %94 = vector.extract_strided_slice %0 {offsets = [0, 13], sizes = [8, 1], strides = [1, 1]} : vector<8x16xi32> to vector<8x1xi32>
    %95 = vector.broadcast %94 : vector<8x1xi32> to vector<8x64xi32>
    %96 = vector.broadcast %1 : vector<1x64xi32> to vector<8x64xi32>
    %97 = arith.cmpi eq, %95, %96 : vector<8x64xi32>
    %98 = arith.extui %97 : vector<8x64xi1> to vector<8x64xi32>
    %99 = arith.sitofp %98 : vector<8x64xi32> to vector<8x64xf32>
    %100 = arith.addf %93, %99 : vector<8x64xf32>
    %101 = vector.extract_strided_slice %0 {offsets = [0, 14], sizes = [8, 1], strides = [1, 1]} : vector<8x16xi32> to vector<8x1xi32>
    %102 = vector.broadcast %101 : vector<8x1xi32> to vector<8x64xi32>
    %103 = vector.broadcast %1 : vector<1x64xi32> to vector<8x64xi32>
    %104 = arith.cmpi eq, %102, %103 : vector<8x64xi32>
    %105 = arith.extui %104 : vector<8x64xi1> to vector<8x64xi32>
    %106 = arith.sitofp %105 : vector<8x64xi32> to vector<8x64xf32>
    %107 = arith.addf %100, %106 : vector<8x64xf32>
    %108 = vector.extract_strided_slice %0 {offsets = [0, 15], sizes = [8, 1], strides = [1, 1]} : vector<8x16xi32> to vector<8x1xi32>
    %109 = vector.broadcast %108 : vector<8x1xi32> to vector<8x64xi32>
    %110 = vector.broadcast %1 : vector<1x64xi32> to vector<8x64xi32>
    %111 = arith.cmpi eq, %109, %110 : vector<8x64xi32>
    %112 = arith.extui %111 : vector<8x64xi1> to vector<8x64xi32>
    %113 = arith.sitofp %112 : vector<8x64xi32> to vector<8x64xf32>
    %114 = arith.addf %107, %113 : vector<8x64xf32>
    %c0_1 = arith.constant 0 : index
    %c0_2 = arith.constant 0 : index
    %115 = vector.load %arg2[%c0_1, %c0_2] : memref<64x32xf32, #tpu.memory_space<vmem>>, vector<64x32xf32>
    %cst_3 = arith.constant dense<0.000000e+00> : vector<8x32xf32>
    %116 = tpu.matmul %114, %115, %cst_3 {dimension_numbers = #tpu.dot_dimension_numbers<[1], [0], [0], [1], [0, 0, 1, 1], [], []>} : vector<8x64xf32>, vector<64x32xf32>, vector<8x32xf32> -> vector<8x32xf32>
    %117 = vector.extract_strided_slice %114 {offsets = [0, 0], sizes = [8, 1], strides = [1, 1]} : vector<8x64xf32> to vector<8x1xf32>
    %118 = vector.extract_strided_slice %114 {offsets = [0, 1], sizes = [8, 1], strides = [1, 1]} : vector<8x64xf32> to vector<8x1xf32>
    %119 = arith.addf %117, %118 : vector<8x1xf32>
    %cst_4 = arith.constant 1.600000e+01 : f32
    %120 = vector.broadcast %cst_4 : f32 to vector<8x1xf32>
    %121 = arith.subf %120, %119 : vector<8x1xf32>
    %cst_5 = arith.constant 9.99999971E-10 : f32
    %122 = vector.broadcast %cst_5 : f32 to vector<8x1xf32>
    %123 = arith.addf %121, %122 : vector<8x1xf32>
    %124 = tpu.reciprocal %123 {approx = true} : vector<8x1xf32> -> vector<8x1xf32>
    %125 = vector.broadcast %124 : vector<8x1xf32> to vector<8x32xf32>
    %126 = arith.mulf %116, %125 : vector<8x32xf32>
    %c0_6 = arith.constant 0 : index
    %c0_7 = arith.constant 0 : index
    %127 = vector.load %arg3[%c0_6, %c0_7] : memref<8x32xf32, #tpu.memory_space<vmem>>, vector<8x32xf32>
    tpu.vector_store %arg3[%c0_6, %c0_7], %126 {strides = array<i32>} : memref<8x32xf32, #tpu.memory_space<vmem>>, vector<8x32xf32>,
    return
  }
  func.func @transform_0(%arg0: i32) -> (i32, i32) {
    %c0_i32 = arith.constant 0 : i32
    %c0_i32_0 = arith.constant 0 : i32
    return %arg0, %c0_i32 : i32, i32
  }
  func.func @transform_1(%arg0: i32) -> (i32, i32) {
    %c0_i32 = arith.constant 0 : i32
    %c0_i32_0 = arith.constant 0 : i32
    %c0_i32_1 = arith.constant 0 : i32
    return %c0_i32, %c0_i32_0 : i32, i32
  }
  func.func @transform_2(%arg0: i32) -> (i32, i32) {
    %c0_i32 = arith.constant 0 : i32
    %c0_i32_0 = arith.constant 0 : i32
    return %arg0, %c0_i32 : i32, i32
  }
}

</mosaic_0001>

<bundles_post_ra>
// kernel: tpu_custom_call.1
= control target key start
LH: loop header
LB: loop body
LE: loop exit
PB: predicated region body
PF: predicated region fallthrough
CT: control target
= control target key end

     0   :  { %7 = vsyncpa [#allocation3], 0  ;;  %s825_s0 = inlined_call_operand.vmem [shape: s32[16,16], index: 0, kind: input, shape index: {}]   ;;  %s826_s1 = inlined_call_operand.vmem [shape: f32[64,32], index: 1, kind: input, shape index: {}]   ;;  %s827_s2 = inlined_call_operand.hbm [shape: f32[16,32], index: 2, kind: output, shape index: {}]  }
   0x1   :  { %9 = vsyncpa [#allocation3 + $0x1], 0  ;;  %s653_s9 = smov 0   ;;  %s655_s10 = smov 0  }
   0x2   :  { %s657_s11 = smov 0   ;;  %s659_s12 = smov 0  }
   0x3 LB: > { %s674_s13 = sadd.s32 4294967295, %s616_s12   ;;  %s424_s14 = sadd.s32 4294967294, %s616_s12   ;;  %s616_s12 = sphi %s659_s12, %s833_s12   ;;  %s612_s11 = sphi %s657_s11, %s832_s11   ;;  %s608_s10 = sphi %s655_s10, %s831_s10   ;;  %s604_s9 = sphi %s653_s9, %s830_s9  }
   0x4   : > { %s678_s15 = sadd.s32 1, %s616_s12   ;;  %s69_s16 = sadd.s32 1, %s612_s11 }
   0x5   : > { %s66_s17 = ssub.s32 %s616_s12, %s678_s15  ;;  %p79_p0 = scmp.ne.s32.totalorder %s612_s11, %s608_s10 }
   0x6   : > { %p67_p1 = scmp.eq.s32.totalorder %s66_s17, 0  ;;  %p80_p2 = scmp.eq.s32.totalorder %s674_s13, 1 }
   0x7   : > { %p85_p3 = scmp.ne.s32.totalorder %s608_s10, %s604_s9  ;;  %p86_p4 = scmp.eq.s32.totalorder %s424_s14, 1 }
   0x8   : > { %s689_s18 = scalar_select %p67_p1, %s612_s11, %s69_s16  }
   0x9   : > { %p691_p5 = por %p80_p2, %p79_p0  ;;  %p695_p6 = por %p86_p4, %p85_p3 }
   0xa   : > { %p427_p7 = scmp.ge.s32.totalorder %s616_s12, 1  ;;  %p114_p8 = scmp.lt.s32.totalorder %s616_s12, 3 }
   0xc   : > { %p115_p9 = pnand %p427_p7, %p114_p8 }
   0xd   : > { %p135_p10 = scmp.lt.s32.totalorder (!%p115_p9), %s674_s13, 1  ;;  %s636_s23 = smov (!%p115_p9), 127  }
   0xe   : > { %118 = sbr.rel (%p115_p9) target bundleno = 471 (0x1d7), region = 28  ;;  %s132_s24 = sand.u32 (!%p115_p9), 1, %s608_s10  }
   0xf   : > { %s448_s26 = sshll.u32 (!%p115_p9), %s674_s13, 7  ;;  %s352_s4 = scalar_lea.sflag (!%p115_p9), [#allocation3], %s132_s24 }
  0x10   : > { %s363_s3 = scalar_lea.hbm (!%p115_p9), %s827_s2, %s448_s26  ;;  %s637_s6 = smov (!%p115_p9), [#allocation2]  }
  0x11   : > { %s560_s7 = sshll.u32 (!%p115_p9), %s637_s6, 4  ;;  %s561_s7 = int_to_ptr.vmem [resolvable:$false] %s560_s7 }
  0x13   : > { %v618_v0 = vmov 2   ;;  %v619_v1 = vmov 0   ;;  %s136_s21 = scalar_select %p135_p10, %s674_s13, 1  ;;  %v620_v2 = vmov 0.0   ;;  %v621_v4 = vmov 3   ;;  %v261_v15 = vld [vmem:[%s826_s1 + $0x38] sm:$0xff] }
  0x14   : > { %539 = vset.pattern.permute.xlu1 %v618_v0  ;;  %537 = vset.pattern.permute.xlu0 %v619_v1  ;;  %v622_v5 = vmov 1   ;;  %v623_v6 = vmov 4   ;;  %v624_v7 = vmov 5   ;;  %v625_v8 = vmov 6   ;;  %v260_v16 = vld [vmem:[%s826_s1 + $0x30] sm:$0xff]  ;;  %v259_v17 = vld [vmem:[%s826_s1 + $0x28] sm:$0xff] }
  0x15   : > { %s429_s22 = sshll.u32 %s136_s21, 3  ;;  %460 = vmatprep.subr.mxu0 %v620_v2  ;;  %v626_v9 = vmov 8   ;;  %v627_v10 = vmov 7   ;;  %v628_v11 = vmov 11   ;;  %v629_v12 = vmov 9   ;;  %v258_v19 = vld [vmem:[%s826_s1 + $0x20] sm:$0xff] }
  0x16   : > { %s138_s25 = scalar_lea.vmem %s825_s0, %s429_s22  ;;  %v630_v13 = vmov 14   ;;  %v631_v14 = vmov 10   ;;  %461 = vmatpush3.msra.mxu0 %v261_v15  ;;  %v632_v18 = vmov 12   ;;  %v257_v20 = vld [vmem:[%s826_s1 + $0x18] sm:$0xff]  ;;  %v633_v21 = vmov 13   ;;  %v256_v22 = vld [vmem:[%s826_s1 + $0x10] sm:$0xff] }
  0x17   : > { %v707_v3 = vld [vmem:[%s138_s25] sm:$0xff]  ;;  %462 = vmatprep.subr.mxu0 %v620_v2  ;;  %v255_v23 = vld [vmem:[%s826_s1 + $0x8] sm:$0xff]  ;;  %v634_v25 = vmov 15   ;;  %vm635_vm0 = vmmov 0   ;;  %v140_v26 = vlaneseq  ;;  %s428_s25 = sshll.u32 %s132_s24, 3  ;;  %s562_s13 = scalar_lea.vmem %s561_s7, 256 }
  0x18   : > { %157 = vperm.xlu1 %539, %v707_v3   ;;  %143 = vperm.xlu0 %537, %v707_v3   ;;  %v254_v24 = vld [vmem:[%s826_s1] sm:$0xff]  ;;  %s134_s27 = scalar_lea.vmem [#allocation2], %s428_s25 }
  0x19   : > { %463 = vmatpush3.msra.mxu0 %v260_v16  ;;  %476 = vmatprep.mubr.msk.f32.mxu0 %vm635_vm0, %v620_v2  ;;  %v757_v27 = vand.u32 127, %v140_v26  ;;  %s365_s28 = sshll.u32 %s134_s27, 4  ;;  %s366_s28 = int_to_ptr.vmem [resolvable:$true] %s365_s28 }
  0x1a   : > { %464 = vmatprep.subr.mxu0 %v620_v2  ;;  %s556_s5 = scalar_lea.vmem %s366_s28, 128  ;;  %p563_p0 = scmp.lt.s32.totalorder %s366_s28, %s561_s7 }
  0x1b   : > { %465 = vmatpush3.msra.mxu0 %v259_v17  ;;  %p557_p11 = scmp.ne.s32.totalorder %s366_s28, %s556_s5  ;;  %p564_p1 = scmp.lt.s32.totalorder %s562_s13, %s556_s5 }
  0x1c   : > { %540 = vset.pattern.permute.xlu1 %v621_v4  ;;  %538 = vset.pattern.permute.xlu0 %v622_v5 }
  0x1d   : > { %164 = vperm.xlu1 %540, %v707_v3   ;;  %150 = vperm.xlu0 %538, %v707_v3   ;;  %p558_p12 = pnand %p557_p11, %p691_p5  ;;  %p565_p2 = por %p564_p1, %p563_p0 }
  0x1e   : > { %466 = vmatprep.subr.mxu0 %v620_v2 }
  0x1f   : > { %467 = vmatpush3.msra.mxu0 %v258_v19  ;;  %p559_p13 = pneg %p558_p12 }
  0x20   : > { %468 = vmatprep.subr.mxu0 %v620_v2 }
  0x21   : > { %541 = vset.pattern.permute.xlu1 %v623_v6  ;;  %542 = vset.pattern.permute.xlu0 %v624_v7  ;;  %p566_p3 = pnand %p565_p2, %p559_p13 }
  0x22   : > { %171 = vperm.xlu1 %541, %v707_v3   ;;  %178 = vperm.xlu0 %542, %v707_v3  }
  0x23   : > { %469 = vmatpush3.msra.mxu0 %v257_v20 }
  0x24   : > { %470 = vmatprep.subr.mxu0 %v620_v2 }
  0x25   : > { %471 = vmatpush3.msra.mxu0 %v256_v22 }
  0x26   : > { %543 = vset.pattern.permute.xlu1 %v625_v8  ;;  %545 = vset.pattern.permute.xlu0 %v626_v9 }
  0x27   : > { %185 = vperm.xlu1 %543, %v707_v3   ;;  %199 = vperm.xlu0 %545, %v707_v3  }
  0x28   : > { %472 = vmatprep.subr.mxu0 %v620_v2 }
  0x29   : > { %473 = vmatpush3.msra.mxu0 %v255_v23 }
  0x2a   : > { %474 = vmatprep.subr.mxu0 %v620_v2 }
  0x2b   : > { %544 = vset.pattern.permute.xlu1 %v627_v10  ;;  %548 = vset.pattern.permute.xlu0 %v628_v11 }
  0x2c   : > { %192 = vperm.xlu1 %544, %v707_v3   ;;  %220 = vperm.xlu0 %548, %v707_v3  }
  0x2d   : > { %475 = vmatpush3.msra.mxu0 %v254_v24 }
  0x30   : > { %546 = vset.pattern.permute.xlu1 %v629_v12  ;;  %551 = vset.pattern.permute.xlu0 %v630_v13 }
  0x31   : > { %206 = vperm.xlu1 %546, %v707_v3   ;;  %241 = vperm.xlu0 %551, %v707_v3  }
  0x35   : > { %547 = vset.pattern.permute.xlu1 %v631_v14  ;;  %553 = vset.pattern.permute.xlu0 %v619_v1 }
  0x36   : > { %213 = vperm.xlu1 %547, %v707_v3  }
  0x3a   : > { %549 = vset.pattern.permute.xlu1 %v632_v18 }
  0x3b   : > { %227 = vperm.xlu1 %549, %v707_v3  }
  0x3f   : > { %550 = vset.pattern.permute.xlu1 %v633_v21 }
  0x40   : > { %234 = vperm.xlu1 %550, %v707_v3  }
  0x44   : > { %552 = vset.pattern.permute.xlu1 %v634_v25 }
  0x45   : > { %248 = vperm.xlu1 %552, %v707_v3  }
  0x93   : > { %v158_v28 = vpop.permute.xlu1 %157  ;;  %v144_v29 = vpop.permute.xlu0 %143 }
  0x94   : > { %vm145_vm1 = vcmp.eq.s32.totalorder %v144_v29, %v757_v27  ;;  %vm159_vm2 = vcmp.eq.s32.totalorder %v158_v28, %v757_v27 }
  0x95   : > { %v430_v30 = vsel %vm145_vm1, 1.0, %v620_v2  ;;  %v432_v35 = vsel %vm159_vm2, 1.0, %v620_v2  ;;  %vm262_vm1 = vcmask 523264   ;;  %vm349_vm2 = vcmask 261120  }
  0x98   : > { %v165_v31 = vpop.permute.xlu1 %164  ;;  %v151_v32 = vpop.permute.xlu0 %150 }
  0x99   : > { %vm152_vm3 = vcmp.eq.s32.totalorder %v151_v32, %v757_v27  ;;  %vm166_vm4 = vcmp.eq.s32.totalorder %v165_v31, %v757_v27 }
  0x9a   : > { %v431_v33 = vsel %vm152_vm3, 1.0, %v620_v2  ;;  %v433_v39 = vsel %vm166_vm4, 1.0, %v620_v2 }
  0x9b   : > { %v155_v34 = vadd.f32 %v431_v33, %v430_v30 }
  0x9d   : > { %v162_v36 = vadd.f32 %v432_v35, %v155_v34  ;;  %v172_v37 = vpop.permute.xlu1 %171  ;;  %v179_v38 = vpop.permute.xlu0 %178 }
  0x9e   : > { %vm173_vm5 = vcmp.eq.s32.totalorder %v172_v37, %v757_v27  ;;  %vm180_vm6 = vcmp.eq.s32.totalorder %v179_v38, %v757_v27 }
  0x9f   : > { %v169_v40 = vadd.f32 %v433_v39, %v162_v36  ;;  %v434_v41 = vsel %vm173_vm5, 1.0, %v620_v2  ;;  %v435_v43 = vsel %vm180_vm6, 1.0, %v620_v2 }
  0xa1   : > { %v176_v42 = vadd.f32 %v434_v41, %v169_v40 }
  0xa2   : > { %v186_v44 = vpop.permute.xlu1 %185  ;;  %v200_v47 = vpop.permute.xlu0 %199 }
  0xa3   : > { %vm187_vm7 = vcmp.eq.s32.totalorder %v186_v44, %v757_v27  ;;  %v183_v45 = vadd.f32 %v435_v43, %v176_v42  ;;  %vm201_vm9 = vcmp.eq.s32.totalorder %v200_v47, %v757_v27 }
  0xa4   : > { %v436_v46 = vsel %vm187_vm7, 1.0, %v620_v2  ;;  %v438_v52 = vsel %vm201_vm9, 1.0, %v620_v2 }
  0xa5   : > { %v190_v49 = vadd.f32 %v436_v46, %v183_v45 }
  0xa7   : > { %v193_v48 = vpop.permute.xlu1 %192  ;;  %v221_v56 = vpop.permute.xlu0 %220 }
  0xa8   : > { %vm194_vm8 = vcmp.eq.s32.totalorder %v193_v48, %v757_v27  ;;  %vm222_vm12 = vcmp.eq.s32.totalorder %v221_v56, %v757_v27 }
  0xa9   : > { %v437_v50 = vsel %vm194_vm8, 1.0, %v620_v2  ;;  %v441_v61 = vsel %vm222_vm12, 1.0, %v620_v2 }
  0xaa   : > { %v197_v51 = vadd.f32 %v437_v50, %v190_v49 }
  0xac   : > { %v207_v53 = vpop.permute.xlu1 %206  ;;  %v204_v54 = vadd.f32 %v438_v52, %v197_v51  ;;  %v242_v63 = vpop.permute.xlu0 %241 }
  0xad   : > { %vm208_vm10 = vcmp.eq.s32.totalorder %v207_v53, %v757_v27  ;;  %vm243_vm14 = vcmp.eq.s32.totalorder %v242_v63, %v757_v27 }
  0xae   : > { %v439_v55 = vsel %vm208_vm10, 1.0, %v620_v2  ;;  %v444_v6 = vsel %vm243_vm14, 1.0, %v620_v2 }
  0xaf   : > { %v211_v58 = vadd.f32 %v439_v55, %v204_v54 }
  0xb1   : > { %v214_v57 = vpop.permute.xlu1 %213 }
  0xb2   : > { %vm215_vm11 = vcmp.eq.s32.totalorder %v214_v57, %v757_v27 }
  0xb3   : > { %v440_v59 = vsel %vm215_vm11, 1.0, %v620_v2 }
  0xb4   : > { %v218_v60 = vadd.f32 %v440_v59, %v211_v58 }
  0xb6   : > { %v228_v62 = vpop.permute.xlu1 %227  ;;  %v225_v0 = vadd.f32 %v441_v61, %v218_v60 }
  0xb7   : > { %vm229_vm13 = vcmp.eq.s32.totalorder %v228_v62, %v757_v27 }
  0xb8   : > { %v442_v1 = vsel %vm229_vm13, 1.0, %v620_v2 }
  0xb9   : > { %v232_v4 = vadd.f32 %v442_v1, %v225_v0 }
  0xbb   : > { %v235_v3 = vpop.permute.xlu1 %234 }
  0xbc   : > { %vm236_vm15 = vcmp.eq.s32.totalorder %v235_v3, %v757_v27 }
  0xbd   : > { %v443_v5 = vsel %vm236_vm15, 1.0, %v620_v2 }
  0xbe   : > { %v239_v7 = vadd.f32 %v443_v5, %v232_v4 }
  0xc0   : > { %v246_v8 = vadd.f32 %v444_v6, %v239_v7  ;;  %v249_v9 = vpop.permute.xlu1 %248 }
  0xc1   : > { %vm250_vm0 = vcmp.eq.s32.totalorder %v249_v9, %v757_v27 }
  0xc2   : > { %v445_v10 = vsel %vm250_vm0, 1.0, %v620_v2 }
  0xc3   : > { %v253_v11 = vadd.f32 %v445_v10, %v246_v8 }
  0xc5   : > { %336 = vrot.lane.b32.xlu1 %v253_v11, %s636_s23  ;;  %477 = vmatmul.mubr.msk.f32.vlgmr.msra.gmra.mxu0 %vm262_vm1, %v253_v11 }
 0x137   : > { %v337_v12 = vpop.permute.xlu1 %336 }
 0x138   : > { %v339_v13 = vadd.f32 %v337_v12, %v253_v11 }
 0x13a   : > { %v340_v14 = vsub.f32 16.0, %v339_v13 }
 0x13c   : > { %v341_v15 = vadd.f32 1e-09, %v340_v14 }
 0x13e   : > { %554 = vrcp.f32 %v341_v15 }
 0x14b   : > { %v555_v16 = vpop.eup %554 }
 0x14c   : > { %345 = vperm.xlu0 %553, %v555_v16  }
 0x185   : > { %v332_v17 = vpop.f32.mrf.mxu0 }
 0x187   : > { %v478_v18 = vpop.f32.mrf.mxu0 }
 0x1c7   : > { %v346_v2 = vpop.permute.xlu0 %345 }
 0x1c8   : > { %v348_v19 = vmul.f32 %v346_v2, %v332_v17 }
 0x1ca   : > { %350 = vst.msk [vmem:[%s134_s27] sm:$0xff] %vm349_vm2, %v348_v19 }
 0x1cb   : > { %569 = shalt.err (!%p566_p3)
}
 0x1cc   : > { %s570_s8 = scalar_lea.hbm %s363_s3, 128  ;;  %s574_s17 = scalar_lea.hbm %s827_s2, 256 }
 0x1cd   : > { %p571_p4 = scmp.ne.s32.totalorder %s363_s3, %s570_s8  ;;  %p575_p9 = scmp.lt.s32.totalorder %s363_s3, %s827_s2 }
 0x1ce   : > { %p576_p10 = scmp.lt.s32.totalorder %s574_s17, %s570_s8 }
 0x1cf   : > { %p572_p7 = pnand %p571_p4, %p691_p5 }
 0x1d0   : > { %p577_p11 = por %p576_p10, %p575_p9 }
 0x1d1   : > { %p573_p8 = pneg %p572_p7 }
 0x1d3   : > { %p578_p12 = pnand %p577_p11, %p573_p8 }
 0x1d5   : > { %581 = shalt.err (!%p578_p12)
}
 0x1d6   : > { %479 = dma.vmem_to_hbm [thread:$0]  (%p691_p5), %s366_s28, 128, %s363_s3, %s352_s4  }
 0x1d7 PF: > { %p485_p13 = scmp.ge.s32.totalorder %s616_s12, 2  ;;  %s377_s23 = sand.u32 1, %s604_s9  }
 0x1d8   : > { %s378_s24 = scalar_lea.sflag [#allocation3], %s377_s23 }
 0x1d9   : > { %p482_p0 = pnand %p485_p13, %p695_p6 }
 0x1db   : > { %p483_p1 = pneg %p482_p0 }
 0x1dd   : > { %599 = dma.done.wait (%p483_p1), %s378_s24, 128  }
 0x1de   : > { %601 = vsyncadd (%p483_p1), %s378_s24, 4294967168  ;;  %p12_p2 = scmp.ge.s32.totalorder %s678_s15, 4   ;;  %s830_s9 = smov %s608_s10 }
 0x1df   : > { %s831_s10 = smov %s612_s11  ;;  %s832_s11 = smov %s689_s18 }
 0x1e0   : > { %s833_s12 = smov %s678_s15  ;;  %14 = sbr.rel (!%p12_p2) target bundleno = 3 (0x3), region = 63 }
 0x1e5   :  { %383 = vsyncpa [#allocation3], 1 }
 0x1e6   :  { %385 = vsyncpa [#allocation3 + $0x1], 1 }

</bundles_post_ra>
